<compile_context>
chip_gen: v7x
topology: tpu7x:2x2x1
jax: 0.10.0
libtpu: 0.0.40
codegen_flags: <defaults>
</compile_context>

<pallas_src>
import functools
import math
from functools import partial

import jax
import jax.numpy as jnp
from jax import lax
from jax.experimental import pallas as pl
from jax.experimental.pallas import tpu as pltpu


_NEG_INF = -1e30          # finite "-inf": avoids exp(-inf - -inf) = NaN


# ----------------------------------------------------------------------------
# Small helpers
# ----------------------------------------------------------------------------
def _sublane_align(dtype):
    # 8 sublanes for 4-byte dtypes, 16 for bf16, 32 for 1-byte dtypes.
    return max(8, 32 // jnp.dtype(dtype).itemsize)


def _pick_tile(dim, target, align):
    """Largest multiple of `align` that divides `dim` and is <= target.
    Falls back to the full dimension (always a legal block size)."""
    if dim <= target:
        return dim
    t = (target // align) * align
    while t >= align:
        if dim % t == 0:
            return t
        t -= align
    return dim


@functools.lru_cache(maxsize=None)
def _vmem_limit_bytes():
    """Device-aware scoped-VMEM request: ~96 MiB on 128-MiB parts (v5e/v6e),
    ~48 MiB on v7x's 64-MiB TensorCores; conservative fallback if query fails."""
    try:
        cap = int(pltpu.get_tpu_info().vmem_capacity_bytes)
        return max(32 << 20, min((cap * 3) // 4, 100 << 20))
    except Exception:
        return 48 << 20


# ----------------------------------------------------------------------------
# Tiled linear:  Y = X @ Wt + b   (Wt pre-transposed to (in, out))
# Optionally scatters the result into `out_parts` equal slabs along N so fused
# QKV / KV projections feed the attention kernel with zero intermediate copies.
# ----------------------------------------------------------------------------
def _linear_kernel_noacc(x_ref, w_ref, b_ref, o_ref):
    y = jnp.dot(x_ref[...], w_ref[...], preferred_element_type=jnp.float32)
    y = (y + b_ref[...].astype(jnp.float32)).astype(o_ref.dtype)
    o_ref[...] = y.reshape(o_ref.shape)


def _linear_kernel_acc(x_ref, w_ref, b_ref, o_ref, acc_ref):
    k = pl.program_id(2)

    @pl.when(k == 0)
    def _():
        acc_ref[...] = jnp.zeros_like(acc_ref)

    acc_ref[...] += jnp.dot(x_ref[...], w_ref[...],
                            preferred_element_type=jnp.float32)

    @pl.when(k == pl.num_programs(2) - 1)
    def _():
        y = (acc_ref[...] + b_ref[...].astype(jnp.float32)).astype(o_ref.dtype)
        o_ref[...] = y.reshape(o_ref.shape)


def _linear(x2d, wT, b, *, out_parts=1, tm_target=256, tn_target=512):
    """x2d: (M, K); wT: (K, N) pre-transposed; b: (N,).
    Returns (M, N) if out_parts == 1, else (out_parts, M, N // out_parts)."""
    M, K = x2d.shape
    K2, N = wT.shape
    assert K == K2 and N % out_parts == 0
    Np = N // out_parts
    dtype = x2d.dtype
    itemsize = jnp.dtype(dtype).itemsize
    sub = _sublane_align(dtype)

    vmem_limit = _vmem_limit_bytes()
    budget = (vmem_limit * 3) // 4

    # Tile search: prefer keeping the whole reduction (K) axis resident, which
    # removes the k grid axis + accumulator init/finalize and streams each
    # weight tile from HBM exactly once per output tile.
    tm = tn = tk = None
    for tm_t, tn_t, tk_t in ((tm_target, tn_target, None),
                             (tm_target, tn_target, 2048),
                             (128, 256, 1024),
                             (128, 256, 512),
                             (64, 128, 256),
                             (8, 128, 128)):
        tm_c = _pick_tile(M, tm_t, sub)
        tn_c = _pick_tile(Np, tn_t, 128)
        tk_c = K if tk_t is None else _pick_tile(K, tk_t, 128)
        acc_bytes = tm_c * tn_c * 4 if tk_c < K else 0
        need = (2 * (tm_c * tk_c + tk_c * tn_c + tn_c)
                + 2 * tm_c * tn_c) * itemsize + acc_bytes
        tm, tn, tk = tm_c, tn_c, tk_c
        if need <= budget:
            break
    # TODO(synk): pad ragged (non-divisible) M/N/K instead of full-dim fallback.

    gm, gn, gk = M // tm, N // tn, K // tk
    gnp = Np // tn
    b2 = b.reshape(1, N)

    if out_parts == 1:
        out_shape = jax.ShapeDtypeStruct((M, N), dtype)
        out_block = (tm, tn)
        out_imap2 = lambda j, i: (i, j)
        out_imap3 = lambda j, i, k: (i, j)
    else:
        out_shape = jax.ShapeDtypeStruct((out_parts, M, Np), dtype)
        out_block = (1, tm, tn)
        out_imap2 = lambda j, i: (j // gnp, i, j % gnp)
        out_imap3 = lambda j, i, k: (j // gnp, i, j % gnp)

    if gk == 1:
        # No reduction axis: grid (j outer, i inner) so each (K, tn) weight
        # tile is DMA'd once and reused across all M tiles.
        grid = (gn, gm)
        in_specs = [
            pl.BlockSpec((tm, K), lambda j, i: (i, 0)),
            pl.BlockSpec((K, tn), lambda j, i: (0, j)),
            pl.BlockSpec((1, tn), lambda j, i: (0, j)),
        ]
        out_specs = pl.BlockSpec(out_block, out_imap2)
        kernel = _linear_kernel_noacc
        scratch = []
        sem = ("parallel", "parallel")
    else:
        grid = (gn, gm, gk)
        in_specs = [
            pl.BlockSpec((tm, tk), lambda j, i, k: (i, k)),
            pl.BlockSpec((tk, tn), lambda j, i, k: (k, j)),
            pl.BlockSpec((1, tn), lambda j, i, k: (0, j)),
        ]
        out_specs = pl.BlockSpec(out_block, out_imap3)
        kernel = _linear_kernel_acc
        scratch = [pltpu.VMEM((tm, tn), jnp.float32)]
        sem = ("parallel", "parallel", "arbitrary")

    return pl.pallas_call(
        kernel,
        out_shape=out_shape,
        grid_spec=pltpu.PrefetchScalarGridSpec(
            num_scalar_prefetch=0,
            grid=grid,
            in_specs=in_specs,
            out_specs=out_specs,
            scratch_shapes=scratch),
        compiler_params=pltpu.CompilerParams(
            dimension_semantics=sem,
            vmem_limit_bytes=vmem_limit),
    )(x2d, wT, b2)


# ----------------------------------------------------------------------------
# Head-packed flash attention over (B, S, E) with E = H*D
# ----------------------------------------------------------------------------
def _head_cols(ref, start, size):
    """ref[..., :, start:start+size] with all leading unit dims squeezed."""
    idx = (0,) * (len(ref.shape) - 2) + (slice(None), pl.ds(start, size))
    return ref[idx]


def _flash_attn_kernel(q_ref, k_ref, v_ref, o_ref, m_sc, l_sc, acc_sc, *,
                       num_heads, head_dim, scale, causal, tq, tkv):
    qi = pl.program_id(1)
    ki = pl.program_id(2)

    @pl.when(ki == 0)
    def _():
        m_sc[...] = jnp.full_like(m_sc, _NEG_INF)
        l_sc[...] = jnp.zeros_like(l_sc)
        acc_sc[...] = jnp.zeros_like(acc_sc)

    def compute(masked):
        if masked:
            # 2-D additive bias, shared by all heads, only on straddling blocks.
            i_g = qi * tq + lax.broadcasted_iota(jnp.int32, (tq, tkv), 0)
            j_g = ki * tkv + lax.broadcasted_iota(jnp.int32, (tq, tkv), 1)
            bias = jnp.where(j_g <= i_g, 0.0, _NEG_INF)
        for h in range(num_heads):                       # statically unrolled
            c0 = h * head_dim
            qh = _head_cols(q_ref, c0, head_dim)         # (tq,  D)
            kh = _head_cols(k_ref, c0, head_dim)         # (tkv, D)
            vh = _head_cols(v_ref, c0, head_dim)         # (tkv, D)
            s = lax.dot_general(qh, kh, (((1,), (1,)), ((), ())),
                                preferred_element_type=jnp.float32) * scale
            if masked:
                s = s + bias
            m_prev = m_sc[h]                             # (tq, 1)
            m_new = jnp.maximum(m_prev, s.max(axis=-1, keepdims=True))
            alpha = jnp.exp(m_prev - m_new)
            p = jnp.exp(s - m_new)                       # (tq, tkv)
            l_sc[h] = alpha * l_sc[h] + p.sum(axis=-1, keepdims=True)
            pv = jnp.dot(p.astype(vh.dtype), vh,
                         preferred_element_type=jnp.float32)   # (tq, D)
            csl = pl.ds(c0, head_dim)
            acc_sc[:, csl] = alpha * acc_sc[:, csl] + pv
            m_sc[h] = m_new

    if causal:
        first_q = qi * tq
        last_q = first_q + tq - 1
        first_k = ki * tkv
        last_k = first_k + tkv - 1
        fully_visible = last_k <= first_q
        not_masked = first_k <= last_q
        straddle = jnp.logical_and(not_masked, jnp.logical_not(fully_visible))
        pl.when(fully_visible)(lambda: compute(False))   # interior: no mask cost
        pl.when(straddle)(lambda: compute(True))         # diagonal: masked
        # fully masked blocks: no compute, and K/V DMA is skipped by the
        # clamped index_map in the wrapper.
    else:
        compute(False)

    @pl.when(ki == pl.num_programs(2) - 1)
    def _():
        inv_cols = jnp.concatenate(
            [jnp.broadcast_to(pl.reciprocal(l_sc[h], approx=False),
                              (tq, head_dim))
             for h in range(num_heads)], axis=-1)        # (tq, E)
        o_ref[0] = (acc_sc[...] * inv_cols).astype(o_ref.dtype)  # lane-dense store


def _flash_attention(q_in, k_in, v_in, *, num_heads, is_causal,
                     tq_target=128, tkv_target=256):
    """Each of q_in/k_in/v_in is (array, part):
       part=None  -> array is (B, S, E)
       part=p     -> array is (P, B, S, E), use leading slab p (fused QKV / KV)."""
    q_arr, q_part = q_in
    k_arr, k_part = k_in
    v_arr, v_part = v_in

    if q_part is None:
        B, Sq, E = q_arr.shape
    else:
        _, B, Sq, E = q_arr.shape
    Sk = k_arr.shape[-2]
    assert E % num_heads == 0
    D = E // num_heads
    scale = 1.0 / math.sqrt(D)   # matches F.scaled_dot_product_attention

    sub = _sublane_align(q_arr.dtype)
    tq = _pick_tile(Sq, tq_target, sub)
    tkv = _pick_tile(Sk, tkv_target, sub)
    # TODO(synk): pad/mask ragged sequence lengths instead of full-dim fallback.

    def make_spec(part, is_query):
        t = tq if is_query else tkv

        def kv_j(i, j):
            if is_causal:
                # Clamp so fully-masked (skipped) kv steps re-reference the
                # already-resident block -> Pallas skips the redundant DMA.
                return jnp.minimum(j, (i * tq + tq - 1) // tkv)
            return j

        if part is None:
            block = (1, t, E)
            if is_query:
                def imap(b, i, j):
                    return (b, i, 0)
            else:
                def imap(b, i, j):
                    return (b, kv_j(i, j), 0)
        else:
            block = (1, 1, t, E)
            if is_query:
                def imap(b, i, j):
                    return (part, b, i, 0)
            else:
                def imap(b, i, j):
                    return (part, b, kv_j(i, j), 0)
        return pl.BlockSpec(block, imap)

    kernel = partial(_flash_attn_kernel, num_heads=num_heads, head_dim=D,
                     scale=scale, causal=is_causal, tq=tq, tkv=tkv)

    return pl.pallas_call(
        kernel,
        out_shape=jax.ShapeDtypeStruct((B, Sq, E), q_arr.dtype),
        grid_spec=pltpu.PrefetchScalarGridSpec(
            num_scalar_prefetch=0,
            grid=(B, Sq // tq, Sk // tkv),
            in_specs=[make_spec(q_part, True),
                      make_spec(k_part, False),
                      make_spec(v_part, False)],
            out_specs=pl.BlockSpec((1, tq, E), lambda b, i, j: (b, i, 0)),
            scratch_shapes=[
                pltpu.VMEM((num_heads, tq, 1), jnp.float32),   # m
                pltpu.VMEM((num_heads, tq, 1), jnp.float32),   # l
                pltpu.VMEM((tq, E), jnp.float32),              # acc (lane-dense)
            ]),
        compiler_params=pltpu.CompilerParams(
            dimension_semantics=("parallel", "parallel", "arbitrary"),
            vmem_limit_bytes=_vmem_limit_bytes()),
    )(q_arr, k_arr, v_arr)


# ----------------------------------------------------------------------------
# One-time parameter preparation (NOT in the per-call forward path)
# ----------------------------------------------------------------------------
def prepare_params(params, *, compute_dtype=None):
    """Pre-transpose weights to (in, out) and pre-concatenate the fused QKV /
    KV slabs once.  In a real model keep only the variants you use; this demo
    keeps all of them so every forward branch can be exercised."""
    cast = (lambda t: t.astype(compute_dtype)) if compute_dtype is not None else (lambda t: t)
    wq, wk, wv, wo = (cast(params[n]) for n in ("wq", "wk", "wv", "wo"))
    bq, bk, bv, bo = (cast(params[n]) for n in ("bq", "bk", "bv", "bo"))
    return {
        "wqT": wq.T, "wkT": wk.T, "wvT": wv.T, "woT": wo.T,
        "bq": bq, "bk": bk, "bv": bv, "bo": bo,
        "w_qkvT": jnp.concatenate([wq.T, wk.T, wv.T], axis=1),   # (E, 3E)
        "b_qkv": jnp.concatenate([bq, bk, bv]),
        "w_kvT": jnp.concatenate([wk.T, wv.T], axis=1),          # (E, 2E)
        "b_kv": jnp.concatenate([bk, bv]),
    }


# ----------------------------------------------------------------------------
# Top-level forward (mirrors MultiheadAttention.forward defaults)
# ----------------------------------------------------------------------------
def multihead_attention(query, key, value, prepared, *, num_heads, is_causal=False):
    B, Sq, E = query.shape
    Sk = key.shape[1]
    out_dtype = query.dtype

    cd = prepared["wqT"].dtype
    if query.dtype != cd:
        if (query is key) and (key is value):
            query = key = value = query.astype(cd)
        elif key is value:
            query = query.astype(cd)
            key = value = key.astype(cd)
        else:
            query, key, value = (t.astype(cd) for t in (query, key, value))

    # Fused projections tile the N axis in E-wide parts -> need 128-lane-
    # aligned part width for legal BlockSpecs on the weight/output slabs.
    fuse_ok = (E % 128 == 0)

    if (query is key) and (key is value) and fuse_ok:
        # Self-attention: one fused QKV matmul, output scattered straight into
        # a (3, B, S, E) slab that the attention kernel reads directly.
        qkv = _linear(query.reshape(-1, E), prepared["w_qkvT"], prepared["b_qkv"],
                      out_parts=3).reshape(3, B, Sq, E)
        attn = _flash_attention((qkv, 0), (qkv, 1), (qkv, 2),
                                num_heads=num_heads, is_causal=is_causal)
    elif (key is value) and fuse_ok:
        # Cross-attention with shared K/V input: fused KV projection.
        q = _linear(query.reshape(-1, E), prepared["wqT"], prepared["bq"]).reshape(B, Sq, E)
        kv = _linear(key.reshape(-1, E), prepared["w_kvT"], prepared["b_kv"],
                     out_parts=2).reshape(2, B, Sk, E)
        attn = _flash_attention((q, None), (kv, 0), (kv, 1),
                                num_heads=num_heads, is_causal=is_causal)
    else:
        q = _linear(query.reshape(-1, E), prepared["wqT"], prepared["bq"]).reshape(B, Sq, E)
        k = _linear(key.reshape(-1, E), prepared["wkT"], prepared["bk"]).reshape(B, Sk, E)
        v = _linear(value.reshape(-1, E), prepared["wvT"], prepared["bv"]).reshape(B, Sk, E)
        attn = _flash_attention((q, None), (k, None), (v, None),
                                num_heads=num_heads, is_causal=is_causal)

    # Attention output is already the lane-dense (B, Sq, E) slab out_proj eats.
    out = _linear(attn.reshape(-1, E), prepared["woT"], prepared["bo"])
    return out.reshape(B, Sq, E).astype(out_dtype)


# ----------------------------------------------------------------------------
# Pure-JAX reference (correctness sanity check)
# ----------------------------------------------------------------------------
def _reference(query, key, value, params, *, num_heads, is_causal=False):
    B, Sq, E = query.shape
    Sk = key.shape[1]
    D = E // num_heads
    lin = lambda x, w, b: x @ w.T + b
    q = lin(query, params["wq"], params["bq"]).reshape(B, Sq, num_heads, D).transpose(0, 2, 1, 3)
    k = lin(key,   params["wk"], params["bk"]).reshape(B, Sk, num_heads, D).transpose(0, 2, 1, 3)
    v = lin(value, params["wv"], params["bv"]).reshape(B, Sk, num_heads, D).transpose(0, 2, 1, 3)
    s = jnp.einsum("bhqd,bhkd->bhqk", q, k) / math.sqrt(D)
    if is_causal:
        mask = jnp.tril(jnp.ones((Sq, Sk), dtype=bool))
        s = jnp.where(mask, s, -jnp.inf)
    p = jax.nn.softmax(s, axis=-1)
    o = jnp.einsum("bhqk,bhkd->bhqd", p, v).transpose(0, 2, 1, 3).reshape(B, Sq, E)
    return lin(o, params["wo"], params["bo"])


# ----------------------------------------------------------------------------
# Main
# ----------------------------------------------------------------------------
if __name__ == "__main__":
    embed_dim = 128
    num_heads = 4
    batch = 2
    seq = 8

    root = jax.random.PRNGKey(0)
    ks = jax.random.split(root, 12)

    def init_w(k):
        return jax.random.normal(k, (embed_dim, embed_dim), jnp.float32) * 0.05

    def init_b(k):
        return jax.random.normal(k, (embed_dim,), jnp.float32) * 0.01

    params = {
        "wq": init_w(ks[0]), "bq": init_b(ks[1]),
        "wk": init_w(ks[2]), "bk": init_b(ks[3]),
        "wv": init_w(ks[4]), "bv": init_b(ks[5]),
        "wo": init_w(ks[6]), "bo": init_b(ks[7]),
    }
    prepared = prepare_params(params)   # one-time transpose + fusion (not per-call)

    query = jax.random.normal(ks[8],  (batch, seq, embed_dim), jnp.float32)
    key_t = jax.random.normal(ks[9],  (batch, seq, embed_dim), jnp.float32)
    value = jax.random.normal(ks[10], (batch, seq, embed_dim), jnp.float32)

    # 1) cross-attention: three distinct inputs, non-causal
    out = jax.block_until_ready(
        multihead_attention(query, key_t, value, prepared, num_heads=num_heads))
    ref = _reference(query, key_t, value, params, num_heads=num_heads)
    assert out.shape == (batch, seq, embed_dim)
    assert jnp.allclose(out, ref, atol=2e-3, rtol=2e-3), float(jnp.abs(out - ref).max())

    # 2) causal path (block skipping + clamped K/V DMA + diagonal-only mask)
    out_c = jax.block_until_ready(
        multihead_attention(query, key_t, value, prepared,
                            num_heads=num_heads, is_causal=True))
    ref_c = _reference(query, key_t, value, params, num_heads=num_heads, is_causal=True)
    assert jnp.allclose(out_c, ref_c, atol=2e-3, rtol=2e-3), float(jnp.abs(out_c - ref_c).max())

    # 3) self-attention: fused QKV projection -> (3,B,S,E) slab fed to attention
    out_s = jax.block_until_ready(
        multihead_attention(query, query, query, prepared, num_heads=num_heads))
    ref_s = _reference(query, query, query, params, num_heads=num_heads)
    assert jnp.allclose(out_s, ref_s, atol=2e-3, rtol=2e-3), float(jnp.abs(out_s - ref_s).max())

    # 4) cross-attention with key is value: fused KV projection path
    out_kv = jax.block_until_ready(
        multihead_attention(query, key_t, key_t, prepared, num_heads=num_heads))
    ref_kv = _reference(query, key_t, key_t, params, num_heads=num_heads)
    assert jnp.allclose(out_kv, ref_kv, atol=2e-3, rtol=2e-3), float(jnp.abs(out_kv - ref_kv).max())

    print("KERNEL_OK")
</pallas_src>

<mosaic_0001>
module attributes {stable_mosaic.version = 11 : i64} {
  func.func @_linear_kernel_noacc(%arg0: i32, %arg1: i32, %arg2: memref<16x128xf32, #tpu.memory_space<vmem>>, %arg3: memref<128x128xf32, #tpu.memory_space<vmem>>, %arg4: memref<1x128xf32, #tpu.memory_space<vmem>>, %arg5: memref<16x128xf32, #tpu.memory_space<vmem>>) attributes {dimension_semantics = [#tpu.dimension_semantics<parallel>, #tpu.dimension_semantics<parallel>], iteration_bounds = array<i64: 1, 1>, scalar_prefetch = 0 : i64, scratch_operands = 0 : i64, tpu.core_type = #tpu.core_type<tc>, window_params = [{transform_indices = @transform_0, window_bounds = array<i64: 16, 128>}, {transform_indices = @transform_1, window_bounds = array<i64: 128, 128>}, {transform_indices = @transform_2, window_bounds = array<i64: 1, 128>}, {transform_indices = @transform_3, window_bounds = array<i64: 16, 128>}]} {
    %c0 = arith.constant 0 : index
    %c0_0 = arith.constant 0 : index
    %0 = vector.load %arg2[%c0, %c0_0] : memref<16x128xf32, #tpu.memory_space<vmem>>, vector<16x128xf32>
    %c0_1 = arith.constant 0 : index
    %c0_2 = arith.constant 0 : index
    %1 = vector.load %arg3[%c0_1, %c0_2] : memref<128x128xf32, #tpu.memory_space<vmem>>, vector<128x128xf32>
    %cst = arith.constant dense<0.000000e+00> : vector<16x128xf32>
    %2 = tpu.matmul %0, %1, %cst {dimension_numbers = #tpu.dot_dimension_numbers<[1], [0], [0], [1], [0, 0, 1, 1], [], []>} : vector<16x128xf32>, vector<128x128xf32>, vector<16x128xf32> -> vector<16x128xf32>
    %c0_3 = arith.constant 0 : index
    %c0_4 = arith.constant 0 : index
    %3 = vector.load %arg4[%c0_3, %c0_4] : memref<1x128xf32, #tpu.memory_space<vmem>>, vector<1x128xf32>
    %4 = vector.broadcast %3 : vector<1x128xf32> to vector<16x128xf32>
    %5 = arith.addf %2, %4 : vector<16x128xf32>
    %c0_5 = arith.constant 0 : index
    %c0_6 = arith.constant 0 : index
    %6 = vector.load %arg5[%c0_5, %c0_6] : memref<16x128xf32, #tpu.memory_space<vmem>>, vector<16x128xf32>
    tpu.vector_store %arg5[%c0_5, %c0_6], %5 {strides = array<i32>} : memref<16x128xf32, #tpu.memory_space<vmem>>, vector<16x128xf32>,
    return
  }
  func.func @transform_0(%arg0: i32, %arg1: i32) -> (i32, i32) {
    %c0_i32 = arith.constant 0 : i32
    %c0_i32_0 = arith.constant 0 : i32
    return %arg1, %c0_i32 : i32, i32
  }
  func.func @transform_1(%arg0: i32, %arg1: i32) -> (i32, i32) {
    %c0_i32 = arith.constant 0 : i32
    %c0_i32_0 = arith.constant 0 : i32
    return %c0_i32, %arg0 : i32, i32
  }
  func.func @transform_2(%arg0: i32, %arg1: i32) -> (i32, i32) {
    %c0_i32 = arith.constant 0 : i32
    %c0_i32_0 = arith.constant 0 : i32
    return %c0_i32, %arg0 : i32, i32
  }
  func.func @transform_3(%arg0: i32, %arg1: i32) -> (i32, i32) {
    %c0_i32 = arith.constant 0 : i32
    return %arg1, %arg0 : i32, i32
  }
}

</mosaic_0001>

<bundles_post_ra>
// kernel: tpu_custom_call.1
= control target key start
LH: loop header
LB: loop body
LE: loop exit
PB: predicated region body
PF: predicated region fallthrough
CT: control target
= control target key end

     0   :  { %8 = vsyncpa [#allocation3], 0  ;;  %s399_s0 = inlined_call_operand.hbm [shape: f32[16,128], index: 0, kind: input, shape index: {}]   ;;  %s400_s1 = inlined_call_operand.hbm [shape: f32[128,128], index: 1, kind: input, shape index: {}]   ;;  %s401_s2 = inlined_call_operand.vmem [shape: f32[1,128], index: 2, kind: input, shape index: {}]   ;;  %s402_s3 = inlined_call_operand.hbm [shape: f32[16,128], index: 3, kind: output, shape index: {}]  }
   0x1   :  { %9 = vsyncpa [#allocation6], 0 }
   0x2   :  { %10 = vsyncpa [#allocation4], 0  ;;  %s326_s12 = smov [#allocation2]   ;;  %s254_s16 = scalar_lea.hbm %s399_s0, 256 }
   0x3   :  { %s16_s13 = sshll.u32 %s326_s12, 4  ;;  %p255_p0 = scmp.ne.s32.totalorder %s399_s0, %s254_s16  ;;  %s17_s13 = int_to_ptr.vmem [resolvable:$true] %s16_s13 }
   0x4   :  { %p258_p1 = scmp.lt.u32.totalorder %s254_s16, %s399_s0 }
   0x6   :  { %p260_p2 = pnand %p258_p1, %p255_p0 }
   0x8   :  { %263 = shalt.err (!%p260_p2)
}
   0x9   :  { %s264_s21 = scalar_lea.vmem %s17_s13, 256  ;;  %p269_p4 = scmp.lt.s32.totalorder %s17_s13, %s17_s13 }
   0xa   :  { %p265_p3 = scmp.ne.s32.totalorder %s17_s13, %s264_s21  ;;  %p270_p5 = scmp.lt.s32.totalorder %s264_s21, %s264_s21 }
   0xc   :  { %p271_p6 = por %p270_p5, %p269_p4 }
   0xe   :  { %p272_p7 = pnand %p271_p6, %p265_p3 }
  0x10   :  { %275 = shalt.err (!%p272_p7)
}
  0x11   :  { %s327_s22 = smov 128   ;;  %s328_s23 = smov 8  }
  0x12   :  { %22 = dma.hbm_to_vmem [thread:$0]  %s399_s0, 256, %s17_s13, [#allocation3], %s327_s22, %s327_s22, %s328_s23  }
  0x13   :  { %s329_s26 = smov [#allocation5]   ;;  %s276_s30 = scalar_lea.hbm %s400_s1, 2048 }
  0x14   :  { %s28_s27 = sshll.u32 %s329_s26, 4  ;;  %p277_p8 = scmp.ne.s32.totalorder %s400_s1, %s276_s30  ;;  %s29_s27 = int_to_ptr.vmem [resolvable:$true] %s28_s27 }
  0x15   :  { %p280_p9 = scmp.lt.u32.totalorder %s276_s30, %s400_s1 }
  0x17   :  { %p282_p10 = pnand %p280_p9, %p277_p8 }
  0x19   :  { %285 = shalt.err (!%p282_p10)
}
  0x1a   :  { %s286_s8 = scalar_lea.vmem %s29_s27, 2048  ;;  %p291_p12 = scmp.lt.s32.totalorder %s29_s27, %s29_s27 }
  0x1b   :  { %p287_p11 = scmp.ne.s32.totalorder %s29_s27, %s286_s8  ;;  %p292_p13 = scmp.lt.s32.totalorder %s286_s8, %s286_s8 }
  0x1d   :  { %p293_p0 = por %p292_p13, %p291_p12 }
  0x1f   :  { %p294_p1 = pnand %p293_p0, %p287_p11 }
  0x21   :  { %297 = shalt.err (!%p294_p1)
}
  0x22   :  { %34 = dma.hbm_to_vmem [thread:$0]  %s400_s1, 2048, %s29_s27, [#allocation6], %s327_s22, %s327_s22, %s328_s23  }
  0x23   :  { %320 = dma.done.wait [#allocation3], 256  }
  0x24   :  { %321 = vsyncadd [#allocation3], 4294967040 }
  0x25   :  { %322 = dma.done.wait [#allocation6], 2048  }
  0x26   :  { %323 = vsyncadd [#allocation6], 4294965248  ;;  %v45_v0 = vld [vmem:[#allocation5] sm:$0xff]  ;;  %v46_v1 = vld [vmem:[#allocation5 + $0x8] sm:$0xff]  ;;  %s330_s11 = smov [#allocation7]  }
  0x27   :  { %v47_v2 = vld [vmem:[#allocation5 + $0x10] sm:$0xff]  ;;  %v217_v3 = vpack.c.bf16 %v46_v1, %v45_v0  ;;  %v48_v4 = vld [vmem:[#allocation5 + $0x18] sm:$0xff]  ;;  %v49_v6 = vld [vmem:[#allocation5 + $0x20] sm:$0xff]  ;;  %s150_s12 = sshll.u32 %s330_s11, 4  ;;  %s151_s12 = int_to_ptr.vmem [resolvable:$true] %s150_s12 }
  0x28   :  { %v221_v5 = vpack.c.bf16 %v48_v4, %v47_v2  ;;  %v50_v7 = vld [vmem:[#allocation5 + $0x28] sm:$0xff]  ;;  %v43_v9 = vld [vmem:[#allocation2] sm:$0xff]  ;;  %v52_v11 = vld [vmem:[#allocation5 + $0x38] sm:$0xff]  ;;  %s298_s13 = scalar_lea.vmem %s151_s12, 256  ;;  %p303_p3 = scmp.lt.s32.totalorder %s151_s12, %s151_s12 }
  0x29   :  { %218 = vmatprep.subr.bf16.mxu0 %v217_v3  ;;  %v225_v8 = vpack.c.bf16 %v50_v7, %v49_v6  ;;  %v51_v10 = vld [vmem:[#allocation5 + $0x30] sm:$0xff]  ;;  %214 = vmatprep.mubr.f32.mxu0 %v43_v9  ;;  %v53_v13 = vld [vmem:[#allocation5 + $0x40] sm:$0xff]  ;;  %v54_v14 = vld [vmem:[#allocation5 + $0x48] sm:$0xff]  ;;  %p299_p2 = scmp.ne.s32.totalorder %s151_s12, %s298_s13  ;;  %p304_p4 = scmp.lt.s32.totalorder %s298_s13, %s298_s13 }
  0x2a   :  { %220 = vmatpush3.bf16.msra.mxu0 %v217_v3  ;;  %v229_v12 = vpack.c.bf16 %v52_v11, %v51_v10  ;;  %v233_v15 = vpack.c.bf16 %v54_v14, %v53_v13  ;;  %v55_v16 = vld [vmem:[#allocation5 + $0x50] sm:$0xff]  ;;  %v56_v17 = vld [vmem:[#allocation5 + $0x58] sm:$0xff]  ;;  %v57_v19 = vld [vmem:[#allocation5 + $0x60] sm:$0xff] }
  0x2b   :  { %222 = vmatprep.subr.bf16.mxu0 %v221_v5  ;;  %v237_v18 = vpack.c.bf16 %v56_v17, %v55_v16  ;;  %v58_v20 = vld [vmem:[#allocation5 + $0x68] sm:$0xff]  ;;  %v59_v22 = vld [vmem:[#allocation5 + $0x70] sm:$0xff]  ;;  %v60_v23 = vld [vmem:[#allocation5 + $0x78] sm:$0xff]  ;;  %p305_p5 = por %p304_p4, %p303_p3 }
  0x2c   :  { %v241_v21 = vpack.c.bf16 %v58_v20, %v57_v19  ;;  %v245_v24 = vpack.c.bf16 %v60_v23, %v59_v22  ;;  %v44_v25 = vld [vmem:[#allocation2 + $0x8] sm:$0xff]  ;;  %v163_v26 = vld [vmem:[%s401_s2] ss:$0 sm:$0xff] }
  0x2d   :  { %p306_p6 = pnand %p305_p5, %p299_p2 }
  0x2e   :  { %224 = vmatpush3.bf16.msra.mxu0 %v221_v5 }
  0x2f   :  { %226 = vmatprep.subr.bf16.mxu0 %v225_v8 }
  0x32   :  { %228 = vmatpush3.bf16.msra.mxu0 %v225_v8 }
  0x33   :  { %230 = vmatprep.subr.bf16.mxu0 %v229_v12 }
  0x36   :  { %232 = vmatpush3.bf16.msra.mxu0 %v229_v12 }
  0x37   :  { %234 = vmatprep.subr.bf16.mxu0 %v233_v15 }
  0x3a   :  { %236 = vmatpush3.bf16.msra.mxu0 %v233_v15 }
  0x3b   :  { %238 = vmatprep.subr.bf16.mxu0 %v237_v18 }
  0x3e   :  { %240 = vmatpush3.bf16.msra.mxu0 %v237_v18 }
  0x3f   :  { %242 = vmatprep.subr.bf16.mxu0 %v241_v21 }
  0x42   :  { %244 = vmatpush3.bf16.msra.mxu0 %v241_v21 }
  0x43   :  { %246 = vmatprep.subr.bf16.mxu0 %v245_v24 }
  0x46   :  { %248 = vmatpush3.bf16.msra.mxu0 %v245_v24 }
  0x49   :  { %215 = vmatmul.mubr.f32.vlgmr.msra.gmra.mrb[0].mxu0 %v44_v25 }
 0x11c   :  { %v216_v27 = vpop.f32.mrb[0].mxu0 }
 0x11d   :  { %v140_v28 = vadd.f32 %v216_v27, %v163_v26  ;;  %v134_v29 = vpop.f32.mrb[1].mxu0 }
 0x11e   :  { %v135_v30 = vadd.f32 %v163_v26, %v134_v29 }
 0x11f   :  { %144 = vst [vmem:[#allocation7 + $0x8] sm:$0xff] %v140_v28 }
 0x120   :  { %143 = vst [vmem:[#allocation7] sm:$0xff] %v135_v30 }
 0x121   :  { %309 = shalt.err (!%p306_p6)
}
 0x122   :  { %s310_s2 = scalar_lea.hbm %s402_s3, 256 }
 0x123   :  { %p311_p7 = scmp.ne.s32.totalorder %s402_s3, %s310_s2  ;;  %p314_p8 = scmp.lt.u32.totalorder %s310_s2, %s402_s3 }
 0x125   :  { %p316_p9 = pnand %p314_p8, %p311_p7 }
 0x127   :  { %319 = shalt.err (!%p316_p9)
}
 0x128   :  { %156 = dma.vmem_to_hbm [thread:$0]  %s151_s12, 256, %s402_s3, [#allocation4], %s327_s22, %s327_s22, %s328_s23  }
 0x129   :  { %324 = dma.done.wait [#allocation4], 256  }
 0x12a   :  { %325 = vsyncadd [#allocation4], 4294967040 }
 0x12b   :  { %160 = vsyncpa [#allocation3], 1 }
 0x12c   :  { %161 = vsyncpa [#allocation6], 1 }
 0x12d   :  { %162 = vsyncpa [#allocation4], 1 }

</bundles_post_ra>
